<compile_context>
chip_gen: v5e
topology: v5e:2x2
jax: 0.10.0
libtpu: 0.0.40
codegen_flags: <defaults>
</compile_context>

<pallas_src>
import functools

import jax
import jax.numpy as jnp
from jax.experimental import pallas as pl
from jax.experimental.pallas import tpu as pltpu


def _soft_entropy_rows_kernel(inp_ref, tgt_ref, out_ref):
    """Writes the per-row loss sum_c -softmax(t)[c] * log_softmax(x)[c] as (tb, 1)."""
    x = inp_ref[...].astype(jnp.float32)   # (tb, C)
    t = tgt_ref[...].astype(jnp.float32)   # (tb, C)

    # Stabilized log-sum-exp of the inputs (lane-axis reductions only).
    x_s = x - jnp.max(x, axis=1, keepdims=True)                      # (tb, C)
    lse = jnp.log(jnp.sum(jnp.exp(x_s), axis=1, keepdims=True))      # (tb, 1)

    # Unnormalized softmax of the targets.
    t_e = jnp.exp(t - jnp.max(t, axis=1, keepdims=True))             # (tb, C)
    z = jnp.sum(t_e, axis=1, keepdims=True)                          # (tb, 1)

    # 1/Z on the EUP; one Newton step restores ~full f32 accuracy at (tb,1) cost.
    z_inv = pl.reciprocal(z, approx=True)
    z_inv = z_inv * (2.0 - z * z_inv)

    # sum_c softmax(t)[c] * (lse - x_s[c]) = lse - sum_c(t_e * x_s) / Z
    out_ref[...] = lse - jnp.sum(t_e * x_s, axis=1, keepdims=True) * z_inv


def soft_entropy(inputs, targets, *, batch_tile=None):
    """Pallas implementation of SoftEntropy.forward. Returns a scalar float32."""
    assert inputs.shape == targets.shape and inputs.ndim == 2
    n, c = inputs.shape
    itemsize = jnp.dtype(inputs.dtype).itemsize

    # ---- VMEM budget (per generation) and batch-tile selection -------------
    try:
        vmem_cap = int(pltpu.get_tpu_info().vmem_capacity_bytes)
    except Exception:  # conservative fallback: v7x per-core VMEM
        vmem_cap = 64 * 1024 * 1024
    vmem_limit = min(vmem_cap // 2, 64 * 1024 * 1024)   # scoped limit we request
    budget = vmem_limit // 2                             # for pipeline buffers + temps

    row_align = max(8, 32 // max(itemsize, 1))           # 8 rows f32, 16 rows bf16

    if batch_tile is not None:
        bt = int(batch_tile)
    else:
        # 2 arrays x 2 pipeline buffers (HBM dtype) + ~4 f32 temporaries per row.
        bytes_per_row = c * (4 * itemsize + 16)
        bt = min(1024, int(budget // bytes_per_row))

    if bt >= n:
        # Tiny problem: a single block covering the whole batch (grid of one step).
        bt = n
        n_pad = n
    else:
        bt = max(row_align, (bt // row_align) * row_align)
        # Prefer a tile that divides N exactly so no pad copy of the inputs is needed.
        d = bt
        while d >= row_align and n % d != 0:
            d -= row_align
        if d >= row_align:
            bt = d
        n_pad = int(pl.cdiv(n, bt)) * bt

    x, t = inputs, targets
    if n_pad != n:
        # Padded rows produce a finite garbage loss; they are sliced off below.
        pad = ((0, n_pad - n), (0, 0))
        x = jnp.pad(x, pad)
        t = jnp.pad(t, pad)

    grid = (n_pad // bt,)

    row_losses = pl.pallas_call(
        _soft_entropy_rows_kernel,
        out_shape=jax.ShapeDtypeStruct((n_pad, 1), jnp.float32),
        grid=grid,
        in_specs=[
            pl.BlockSpec((bt, c), lambda i: (i, 0)),
            pl.BlockSpec((bt, c), lambda i: (i, 0)),
        ],
        out_specs=pl.BlockSpec((bt, 1), lambda i: (i, 0)),
        compiler_params=pltpu.CompilerParams(
            dimension_semantics=("parallel",),       # independent tiles -> both TCs on v7x
            vmem_limit_bytes=int(vmem_limit),
        ),
    )(x, t)

    # .mean(0).sum() == (1/N) * sum of per-row losses (exclude padded rows).
    return jnp.sum(row_losses[:n, 0]) / jnp.float32(n)


def soft_entropy_ref(inputs, targets):
    log_probs = jax.nn.log_softmax(inputs.astype(jnp.float32), axis=1)
    p_t = jax.nn.softmax(targets.astype(jnp.float32), axis=1)
    return jnp.sum(jnp.mean(-p_t * log_probs, axis=0))


def _check(inputs, targets, **kw):
    loss = jax.block_until_ready(soft_entropy(inputs, targets, **kw))
    ref = soft_entropy_ref(inputs, targets)
    assert jnp.allclose(loss, ref, rtol=1e-4, atol=1e-4), (loss, ref)


if __name__ == "__main__":
    key = jax.random.PRNGKey(0)
    k1, k2, k3, k4, k5, k6 = jax.random.split(key, 6)

    # 1) Small shape matching the module's typical use: batch=16, num_classes=32
    #    (single-block path, grid of one step).
    N, C = 16, 32
    inputs = jax.random.normal(k1, (N, C), dtype=jnp.float32)
    targets = jax.random.normal(k2, (N, C), dtype=jnp.float32)
    _check(inputs, targets)

    # 2) Multi-tile parallel path with a batch remainder (pads 20 -> 32 rows).
    N2, C2 = 20, 48
    inputs2 = jax.random.normal(k3, (N2, C2), dtype=jnp.float32)
    targets2 = jax.random.normal(k4, (N2, C2), dtype=jnp.float32)
    _check(inputs2, targets2, batch_tile=16)

    # 3) bf16 inputs stay bf16 in HBM, upcast inside the kernel.
    N3, C3 = 48, 96
    inputs3 = jax.random.normal(k5, (N3, C3), dtype=jnp.float32).astype(jnp.bfloat16)
    targets3 = jax.random.normal(k6, (N3, C3), dtype=jnp.float32).astype(jnp.bfloat16)
    _check(inputs3, targets3)

    print("KERNEL_OK")
</pallas_src>

<mosaic_0001>
module attributes {stable_mosaic.version = 11 : i64} {
  func.func @_soft_entropy_rows_kernel(%arg0: i32, %arg1: memref<16x32xf32, #tpu.memory_space<vmem>>, %arg2: memref<16x32xf32, #tpu.memory_space<vmem>>, %arg3: memref<16x1xf32, #tpu.memory_space<vmem>>) attributes {dimension_semantics = [#tpu.dimension_semantics<parallel>], iteration_bounds = array<i64: 1>, scalar_prefetch = 0 : i64, scratch_operands = 0 : i64, tpu.core_type = #tpu.core_type<tc>, window_params = [{transform_indices = @transform_0, window_bounds = array<i64: 16, 32>}, {transform_indices = @transform_1, window_bounds = array<i64: 16, 32>}, {transform_indices = @transform_2, window_bounds = array<i64: 16, 1>}]} {
    %c0 = arith.constant 0 : index
    %c0_0 = arith.constant 0 : index
    %0 = vector.load %arg1[%c0, %c0_0] : memref<16x32xf32, #tpu.memory_space<vmem>>, vector<16x32xf32>
    %c0_1 = arith.constant 0 : index
    %c0_2 = arith.constant 0 : index
    %1 = vector.load %arg2[%c0_1, %c0_2] : memref<16x32xf32, #tpu.memory_space<vmem>>, vector<16x32xf32>
    %cst = arith.constant dense<0xFF800000> : vector<16xf32>
    %2 = vector.multi_reduction <maximumf>, %0, %cst [1] : vector<16x32xf32> to vector<16xf32>
    %3 = vector.shape_cast %2 : vector<16xf32> to vector<16x1xf32>
    %4 = vector.broadcast %3 : vector<16x1xf32> to vector<16x32xf32>
    %5 = arith.subf %0, %4 : vector<16x32xf32>
    %6 = math.exp %5 : vector<16x32xf32>
    %cst_3 = arith.constant dense<0.000000e+00> : vector<16xf32>
    %7 = vector.multi_reduction <add>, %6, %cst_3 [1] : vector<16x32xf32> to vector<16xf32>
    %8 = vector.shape_cast %7 : vector<16xf32> to vector<16x1xf32>
    %9 = math.log %8 : vector<16x1xf32>
    %cst_4 = arith.constant dense<0xFF800000> : vector<16xf32>
    %10 = vector.multi_reduction <maximumf>, %1, %cst_4 [1] : vector<16x32xf32> to vector<16xf32>
    %11 = vector.shape_cast %10 : vector<16xf32> to vector<16x1xf32>
    %12 = vector.broadcast %11 : vector<16x1xf32> to vector<16x32xf32>
    %13 = arith.subf %1, %12 : vector<16x32xf32>
    %14 = math.exp %13 : vector<16x32xf32>
    %cst_5 = arith.constant dense<0.000000e+00> : vector<16xf32>
    %15 = vector.multi_reduction <add>, %14, %cst_5 [1] : vector<16x32xf32> to vector<16xf32>
    %16 = vector.shape_cast %15 : vector<16xf32> to vector<16x1xf32>
    %17 = tpu.reciprocal %16 {approx = true} : vector<16x1xf32> -> vector<16x1xf32>
    %18 = arith.mulf %16, %17 : vector<16x1xf32>
    %cst_6 = arith.constant 2.000000e+00 : f32
    %19 = vector.broadcast %cst_6 : f32 to vector<16x1xf32>
    %20 = arith.subf %19, %18 : vector<16x1xf32>
    %21 = arith.mulf %17, %20 : vector<16x1xf32>
    %22 = arith.mulf %14, %5 : vector<16x32xf32>
    %cst_7 = arith.constant dense<0.000000e+00> : vector<16xf32>
    %23 = vector.multi_reduction <add>, %22, %cst_7 [1] : vector<16x32xf32> to vector<16xf32>
    %24 = vector.shape_cast %23 : vector<16xf32> to vector<16x1xf32>
    %25 = arith.mulf %24, %21 : vector<16x1xf32>
    %26 = arith.subf %9, %25 : vector<16x1xf32>
    %c0_8 = arith.constant 0 : index
    %c0_9 = arith.constant 0 : index
    %27 = vector.load %arg3[%c0_8, %c0_9] : memref<16x1xf32, #tpu.memory_space<vmem>>, vector<16x1xf32>
    tpu.vector_store %arg3[%c0_8, %c0_9], %26 {strides = array<i32>} : memref<16x1xf32, #tpu.memory_space<vmem>>, vector<16x1xf32>,
    return
  }
  func.func @transform_0(%arg0: i32) -> (i32, i32) {
    %c0_i32 = arith.constant 0 : i32
    %c0_i32_0 = arith.constant 0 : i32
    return %arg0, %c0_i32 : i32, i32
  }
  func.func @transform_1(%arg0: i32) -> (i32, i32) {
    %c0_i32 = arith.constant 0 : i32
    %c0_i32_0 = arith.constant 0 : i32
    return %arg0, %c0_i32 : i32, i32
  }
  func.func @transform_2(%arg0: i32) -> (i32, i32) {
    %c0_i32 = arith.constant 0 : i32
    %c0_i32_0 = arith.constant 0 : i32
    return %arg0, %c0_i32 : i32, i32
  }
}

</mosaic_0001>

<bundles_post_ra>
// kernel: tpu_custom_call.1
= control target key start
LH: loop header
LB: loop body
LE: loop exit
PB: predicated region body
PF: predicated region fallthrough
CT: control target
= control target key end

     0   :  { %7 = vsyncpa [#allocation3], 0  ;;  %s230_s0 = inlined_call_operand.hbm [shape: f32[16,32], index: 0, kind: input, shape index: {}]   ;;  %s231_s1 = inlined_call_operand.hbm [shape: f32[16,32], index: 1, kind: input, shape index: {}]   ;;  %s232_s2 = inlined_call_operand.vmem [shape: f32[16,1], index: 2, kind: output, shape index: {}]  }
   0x1   :  { %s13_s11 = sshll.u32 %s230_s0, 4  ;;  %s14_s11 = int_to_ptr.hbm [resolvable:$true] %s13_s11 }
   0x2   :  { %8 = vsyncpa [#allocation5], 0  ;;  %s189_s12 = smov [#allocation2]   ;;  %s26_s16 = sshll.u32 %s231_s1, 4  ;;  %s27_s16 = int_to_ptr.hbm [resolvable:$true] %s26_s16 }
   0x3   :  { %s15_s13 = sshll.u32 %s189_s12, 4  ;;  %s190_s17 = smov 128   ;;  %s16_s13 = int_to_ptr.vmem [resolvable:$true] %s15_s13 }
   0x4   :  { %s191_s18 = smov 8   ;;  %s192_s19 = smov [#allocation4]  }
   0x5   :  { %21 = dma.hbm_to_vmem [thread:$0]  %s14_s11, 256, %s16_s13, [#allocation3], %s190_s17, %s190_s17, %s191_s18  }
   0x6   :  { %s28_s20 = sshll.u32 %s192_s19, 4  ;;  %s29_s20 = int_to_ptr.vmem [resolvable:$true] %s28_s20 }
   0x7   :  { %34 = dma.hbm_to_vmem [thread:$0]  %s27_s16, 256, %s29_s20, [#allocation5], %s190_s17, %s190_s17, %s191_s18  }
   0x8   :  { %185 = dma.done.wait [#allocation3], 256  }
   0x9   :  { %186 = vsyncadd [#allocation3], 4294967040 }
   0xa   :  { %187 = dma.done.wait [#allocation5], 256  }
   0xb   :  { %188 = vsyncadd [#allocation5], 4294967040  ;;  %vm47_vm0 = vcmask 261120   ;;  %v45_v0 = vld [vmem:[#allocation4] sm:$0xff]  ;;  %v43_v1 = vld [vmem:[#allocation2] sm:$0xff]  ;;  %vm108_vm1 = vcmask 7168  }
   0xc   :  { %v70_v2 = vsel %vm47_vm0, %v45_v0, -inf  ;;  %v48_v3 = vsel %vm47_vm0, %v43_v1, -inf  ;;  %v46_v4 = vld [vmem:[#allocation4 + $0x8] sm:$0xff]  ;;  %v44_v5 = vld [vmem:[#allocation2 + $0x8] sm:$0xff] }
   0xd   :  { %71 = vmax.xlane.f32.xlu0 %v70_v2  ;;  %49 = vmax.xlane.f32.xlu1 %v48_v3  ;;  %v73_v6 = vsel %vm47_vm0, %v46_v4, -inf  ;;  %v51_v7 = vsel %vm47_vm0, %v44_v5, -inf }
  0x15   :  { %74 = vmax.xlane.f32.xlu0 %v73_v6  ;;  %52 = vmax.xlane.f32.xlu1 %v51_v7 }
  0x80   :  { %v72_v8 = vpop.xlane.xlu0 %71  ;;  %v50_v9 = vpop.xlane.xlu1 %49 }
  0x81   :  { %v76_v10 = vsub.f32 %v45_v0, %v72_v8  ;;  %v54_v11 = vsub.f32 %v43_v1, %v50_v9 }
  0x83   :  { %v78_v12 = vmul.f32 1.442695, %v76_v10  ;;  %v56_v13 = vmul.f32 1.442695, %v54_v11 }
  0x85   :  { %121 = vpow2.f32 %v78_v12 }
  0x86   :  { %123 = vpow2.f32 %v56_v13 }
  0x88   :  { %v75_v14 = vpop.xlane.xlu0 %74  ;;  %v53_v15 = vpop.xlane.xlu1 %52 }
  0x89   :  { %v77_v16 = vsub.f32 %v46_v4, %v75_v14  ;;  %v55_v17 = vsub.f32 %v44_v5, %v53_v15 }
  0x8b   :  { %v122_v18 = vpop.eup %121  ;;  %v80_v19 = vmul.f32 1.442695, %v77_v16  ;;  %v58_v20 = vmul.f32 1.442695, %v55_v17 }
  0x8c   :  { %v124_v21 = vpop.eup %123  ;;  %v82_v22 = vsel %vm47_vm0, %v122_v18, 0.0  ;;  %v96_v30 = vmul.f32 %v122_v18, %v54_v11 }
  0x8d   :  { %125 = vpow2.f32 %v80_v19  ;;  %83 = vadd.xlane.f32.xlu2 %v82_v22  ;;  %v60_v23 = vsel %vm47_vm0, %v124_v21, 0.0 }
  0x8e   :  { %127 = vpow2.f32 %v58_v20  ;;  %61 = vadd.xlane.f32.xlu0 %v60_v23  ;;  %v98_v31 = vsel %vm47_vm0, %v96_v30, 0.0 }
  0x93   :  { %v126_v24 = vpop.eup %125 }
  0x94   :  { %v128_v25 = vpop.eup %127  ;;  %v85_v26 = vsel %vm47_vm0, %v126_v24, 0.0  ;;  %v97_v27 = vmul.f32 %v126_v24, %v55_v17 }
  0x95   :  { %86 = vadd.xlane.f32.xlu2 %v85_v26  ;;  %v63_v28 = vsel %vm47_vm0, %v128_v25, 0.0 }
  0x96   :  { %v101_v29 = vsel %vm47_vm0, %v97_v27, 0.0  ;;  %64 = vadd.xlane.f32.xlu1 %v63_v28 }
  0x97   :  { %102 = vadd.xlane.f32.xlu0 %v101_v29 }
  0x9d   :  { %99 = vadd.xlane.f32.xlu2 %v98_v31 }
 0x100   :  { %v84_v32 = vpop.xlane.xlu2 %83 }
 0x101   :  { %129 = vrcp.f32 %v84_v32  ;;  %v62_v34 = vpop.xlane.xlu0 %61 }
 0x102   :  { %131 = vlog2.f32 %v62_v34 }
 0x107   :  { %v130_v33 = vpop.eup %129 }
 0x108   :  { %v90_v35 = vmul.f32 %v130_v33, %v84_v32  ;;  %v87_v36 = vpop.xlane.xlu2 %86  ;;  %v132_v39 = vpop.eup %131 }
 0x109   :  { %133 = vrcp.f32 %v87_v36  ;;  %v65_v37 = vpop.xlane.xlu1 %64  ;;  %v67_v45 = vmul.f32 0.6931472, %v132_v39 }
 0x10a   :  { %v92_v38 = vsub.f32 2.0, %v90_v35  ;;  %135 = vlog2.f32 %v65_v37  ;;  %v103_v51 = vpop.xlane.xlu0 %102 }
 0x10c   :  { %v94_v41 = vmul.f32 %v130_v33, %v92_v38 }
 0x10f   :  { %v134_v40 = vpop.eup %133 }
 0x110   :  { %v91_v42 = vmul.f32 %v134_v40, %v87_v36  ;;  %v100_v43 = vpop.xlane.xlu2 %99  ;;  %v136_v44 = vpop.eup %135 }
 0x111   :  { %v104_v46 = vmul.f32 %v100_v43, %v94_v41  ;;  %v69_v50 = vmul.f32 0.6931472, %v136_v44 }
 0x112   :  { %v93_v47 = vsub.f32 2.0, %v91_v42 }
 0x113   :  { %v106_v48 = vsub.f32 %v67_v45, %v104_v46 }
 0x114   :  { %v95_v49 = vmul.f32 %v134_v40, %v93_v47 }
 0x115   :  { %109 = vst.msk [vmem:[%s232_s2] sm:$0xff] %vm108_vm1, %v106_v48 }
 0x116   :  { %v105_v52 = vmul.f32 %v103_v51, %v95_v49 }
 0x118   :  { %v107_v53 = vsub.f32 %v69_v50, %v105_v52 }
 0x11a   :  { %110 = vst.msk [vmem:[%s232_s2 + $0x8] sm:$0xff] %vm108_vm1, %v107_v53 }
 0x11b   :  { %115 = vsyncpa [#allocation3], 1 }
 0x11c   :  { %116 = vsyncpa [#allocation5], 1 }

</bundles_post_ra>
